<compile_context>
chip_gen: v5e
topology: v5e:2x2
jax: 0.10.0
libtpu: 0.0.40
codegen_flags: <defaults>
</compile_context>

<pallas_src>
import jax
import jax.numpy as jnp
from jax.experimental import pallas as pl
from jax.experimental.pallas import tpu as pltpu


def _round_up(x, m):
    return ((x + m - 1) // m) * m


def _vmem_budget_bytes():
    """Per-generation VMEM usage target derived from the physical capacity."""
    try:
        info = pltpu.get_tpu_info()
        cap = int(getattr(info, "vmem_capacity_bytes", 64 * 1024 * 1024))
    except Exception:
        cap = 64 * 1024 * 1024  # conservative fallback (v7x-class)
    if cap <= 64 * 1024 * 1024:
        return 40 * 1024 * 1024   # v7x: 64 MiB per TC -> leave headroom
    return 100 * 1024 * 1024      # v5e / v6e: 128 MiB -> big tiles


def extra_node_kernel(b_ref, x_ref, w_ref, o_ref):
    # b_ref: SMEM (1,)            scalar bias
    # x_ref: VMEM (tile_n, F)     input rows for this grid step
    # w_ref: VMEM (1, F)          weight row (resident; constant index map)
    # o_ref: VMEM (tile_n, 1)     per-row results
    x = x_ref[...]                       # f32
    w = w_ref[...]                       # f32, (1, F) sublane-broadcast
    xsq = x * x                          # VPU
    # Exact f32 reduction over the feature axis (VPU mul + XLU lane reduce).
    s = jnp.sum(xsq * w, axis=1, keepdims=True)          # (tile_n, 1)
    o_ref[...] = s + b_ref[0]


def extra_node(x, weight, bias, *, vmem_budget_bytes=None):
    """ExtraNode forward: y = sum(x**2 * weight, axis=1, keepdims=True) + bias.

    x: (N, F) f32, weight: (1, F) f32, bias: (1,) f32  ->  (N, 1) f32
    """
    N, F = x.shape
    assert weight.shape == (1, F), (
        "ExtraNode's elementwise broadcast requires out_features == 1")

    x = x.astype(jnp.float32)
    weight = weight.astype(jnp.float32)
    bias = bias.astype(jnp.float32)

    if vmem_budget_bytes is None:
        vmem_budget_bytes = _vmem_budget_bytes()

    # --- tile sizing: size by bytes, count the in-kernel temporaries ---------
    # Per row of a tile we pay ~4 row-copies of f32 VMEM:
    #   2 double-buffered x input tiles + the loaded x value + the x*x temp.
    bytes_per_row = F * 4
    rows_budget = max(8, vmem_budget_bytes // (4 * bytes_per_row))
    # Keep >= 2 grid steps so the "parallel" axis can split across v7x's two
    # TensorCores; the extra grid step is noise on single-TC v5e/v6e.
    half_n = _round_up(max(1, (N + 1) // 2), 8)
    tile_n = min(rows_budget, half_n)
    tile_n = max(8, (tile_n // 8) * 8)          # sublane-aligned
    if tile_n >= N:
        tile_n = N                              # block dim == array dim: legal
    num_tiles = pl.cdiv(N, tile_n)              # ragged tail handled by Pallas

    cost = pl.CostEstimate(
        flops=3 * N * F,                        # square + mul + add-reduce
        transcendentals=0,
        bytes_accessed=N * F * 4 + N * 4 + F * 4 + 4,
    )

    out = pl.pallas_call(
        extra_node_kernel,
        out_shape=jax.ShapeDtypeStruct((N, 1), jnp.float32),
        grid=(num_tiles,),
        in_specs=[
            # bias: scalar in SMEM
            pl.BlockSpec(memory_space=pltpu.MemorySpace.SMEM),
            # x: tiled along the batch dim, F whole on lanes; last block may be
            # ragged -> Pallas issues bounded DMAs, OOB rows never written back.
            pl.BlockSpec((tile_n, F), lambda i: (i, 0)),
            # weight row: constant index map -> stays resident, no re-DMA
            pl.BlockSpec((1, F), lambda i: (0, 0)),
        ],
        out_specs=pl.BlockSpec((tile_n, 1), lambda i: (i, 0)),
        compiler_params=pltpu.CompilerParams(
            dimension_semantics=("parallel",),
            vmem_limit_bytes=vmem_budget_bytes,
        ),
        cost_estimate=cost,
    )(bias, x, weight)

    return out


if __name__ == "__main__":
    # Small shapes consistent with the module: N=18 samples (deliberately not a
    # multiple of the tile size to exercise the no-pad ragged-tail path),
    # in_features=32, out_features=1 (required for the PyTorch broadcast).
    N, in_features, out_features = 18, 32, 1

    # Deterministic parameter init exactly as in ExtraNode.__init__:
    #   weight = ones(out_features, in_features) * -0.01 ; bias = ones(1) * 200
    weight = jnp.full((out_features, in_features), -0.01, dtype=jnp.float32)
    bias = jnp.full((1,), 200.0, dtype=jnp.float32)

    key = jax.random.PRNGKey(0)
    x = jax.random.normal(key, (N, in_features), dtype=jnp.float32)

    out = extra_node(x, weight, bias)
    out = jax.block_until_ready(out)

    # Pure-JAX reference of the PyTorch forward.
    ref = jnp.sum((x ** 2) * weight, axis=1, keepdims=True) + bias[0]
    assert out.shape == (N, 1)
    assert jnp.allclose(out, ref, atol=1e-5, rtol=1e-5)

    print("KERNEL_OK")
</pallas_src>

<mosaic_0001>
module attributes {stable_mosaic.version = 11 : i64} {
  func.func @extra_node_kernel(%arg0: i32, %arg1: memref<1xf32, #tpu.memory_space<smem>>, %arg2: memref<16x32xf32, #tpu.memory_space<vmem>>, %arg3: memref<1x32xf32, #tpu.memory_space<vmem>>, %arg4: memref<16x1xf32, #tpu.memory_space<vmem>>) attributes {dimension_semantics = [#tpu.dimension_semantics<parallel>], iteration_bounds = array<i64: 2>, scalar_prefetch = 0 : i64, scratch_operands = 0 : i64, tpu.core_type = #tpu.core_type<tc>, window_params = [{transform_indices = @transform_0, window_bounds = array<i64: 1>}, {transform_indices = @transform_1, window_bounds = array<i64: 16, 32>}, {pipeline_mode = #tpu.pipeline_mode<synchronous>, transform_indices = @transform_2, window_bounds = array<i64: 1, 32>}, {transform_indices = @transform_3, window_bounds = array<i64: 16, 1>}]} {
    %c0 = arith.constant 0 : index
    %c0_0 = arith.constant 0 : index
    %0 = vector.load %arg2[%c0, %c0_0] : memref<16x32xf32, #tpu.memory_space<vmem>>, vector<16x32xf32>
    %c0_1 = arith.constant 0 : index
    %c0_2 = arith.constant 0 : index
    %1 = vector.load %arg3[%c0_1, %c0_2] : memref<1x32xf32, #tpu.memory_space<vmem>>, vector<1x32xf32>
    %2 = arith.mulf %0, %0 : vector<16x32xf32>
    %3 = vector.broadcast %1 : vector<1x32xf32> to vector<16x32xf32>
    %4 = arith.mulf %2, %3 : vector<16x32xf32>
    %cst = arith.constant dense<0.000000e+00> : vector<16xf32>
    %5 = vector.multi_reduction <add>, %4, %cst [1] : vector<16x32xf32> to vector<16xf32>
    %6 = vector.shape_cast %5 : vector<16xf32> to vector<16x1xf32>
    %c0_3 = arith.constant 0 : index
    %7 = memref.load %arg1[%c0_3] : memref<1xf32, #tpu.memory_space<smem>>
    %8 = vector.broadcast %7 : f32 to vector<16x1xf32>
    %9 = arith.addf %6, %8 : vector<16x1xf32>
    %c0_4 = arith.constant 0 : index
    %c0_5 = arith.constant 0 : index
    %10 = vector.load %arg4[%c0_4, %c0_5] : memref<16x1xf32, #tpu.memory_space<vmem>>, vector<16x1xf32>
    tpu.vector_store %arg4[%c0_4, %c0_5], %9 {strides = array<i32>} : memref<16x1xf32, #tpu.memory_space<vmem>>, vector<16x1xf32>,
    return
  }
  func.func @transform_0(%arg0: i32) -> i32 {
    %c0_i32 = arith.constant 0 : i32
    %c0_i32_0 = arith.constant 0 : i32
    return %c0_i32 : i32
  }
  func.func @transform_1(%arg0: i32) -> (i32, i32) {
    %c0_i32 = arith.constant 0 : i32
    %c0_i32_0 = arith.constant 0 : i32
    return %arg0, %c0_i32 : i32, i32
  }
  func.func @transform_2(%arg0: i32) -> (i32, i32) {
    %c0_i32 = arith.constant 0 : i32
    %c0_i32_0 = arith.constant 0 : i32
    %c0_i32_1 = arith.constant 0 : i32
    return %c0_i32, %c0_i32_0 : i32, i32
  }
  func.func @transform_3(%arg0: i32) -> (i32, i32) {
    %c0_i32 = arith.constant 0 : i32
    %c0_i32_0 = arith.constant 0 : i32
    return %arg0, %c0_i32 : i32, i32
  }
}

</mosaic_0001>

<bundles_post_ra>
// kernel: tpu_custom_call.1
= control target key start
LH: loop header
LB: loop body
LE: loop exit
PB: predicated region body
PF: predicated region fallthrough
CT: control target
= control target key end

     0   :  { %s907_s0 = inlined_call_operand.<no memory space> [shape: f32[1], index: 0, kind: input, shape index: {}]   ;;  %s908_s1 = inlined_call_operand.hbm [shape: f32[18,32], index: 1, kind: input, shape index: {}]   ;;  %s909_s2 = inlined_call_operand.vmem [shape: f32[1,32], index: 2, kind: input, shape index: {}]   ;;  %s910_s3 = inlined_call_operand.vmem [shape: f32[18,1], index: 3, kind: output, shape index: {}]  }
   0x1   :  { %8 = sst [smem:[#allocation2]] %s907_s0 }
   0x2   :  { %9 = vsyncpa [#allocation4], 0 }
   0x3   :  { %11 = vsyncpa [#allocation4 + $0x1], 0  ;;  %s759_s14 = smov 0   ;;  %s761_s15 = smov 0  }
   0x4   :  { %s763_s16 = smov 0   ;;  %s765_s17 = smov 0  }
   0x5 LB: > { %s778_s0 = sadd.s32 4294967295, %s699_s17   ;;  %s781_s18 = sadd.s32 1, %s699_s17   ;;  %s699_s17 = sphi %s765_s17, %s917_s17   ;;  %s695_s16 = sphi %s763_s16, %s916_s16   ;;  %s691_s15 = sphi %s761_s15, %s915_s15   ;;  %s687_s14 = sphi %s759_s14, %s914_s14  }
   0x6   : > { %s42_s19 = ssub.s32 %s699_s17, %s781_s18  ;;  %s45_s20 = sadd.s32 1, %s695_s16 }
   0x7   : > { %p43_p0 = scmp.eq.s32.totalorder %s42_s19, 0  ;;  %p52_p1 = scmp.ne.s32.totalorder %s695_s16, %s691_s15 }
   0x8   : > { %p53_p2 = scmp.eq.s32.totalorder %s699_s17, 0  ;;  %p58_p3 = scmp.ne.s32.totalorder %s691_s15, %s687_s14 }
   0x9   : > { %s791_s21 = scalar_select %p43_p0, %s695_s16, %s45_s20  }
   0xa   : > { %p54_p4 = por %p53_p2, %p52_p1  ;;  %p59_p5 = scmp.eq.s32.totalorder %s778_s0, 0 }
   0xb   : > { %p103_p6 = scmp.eq.s32.totalorder %s778_s0, 1  ;;  %p462_p9 = scmp.ge.s32.totalorder %s699_s17, 2 }
   0xc   : > { %p795_p7 = por %p59_p5, %p58_p3 }
   0xd   : > { %p799_p8 = por %p103_p6, %p52_p1  ;;  %131 = sbr.rel (%p462_p9) target bundleno = 54 (0x36), region = 24 }
  0x12   : > { %134 = sbr.rel (!%p54_p4) target bundleno = 54 (0x36), region = 28  ;;  %s135_s24 = sand.u32 (%p54_p4), 1, %s695_s16  }
  0x13   : > { %s464_s25 = sshll.u32 (%p54_p4), %s699_s17, 1  ;;  %s463_s26 = sshll.u32 (%p54_p4), %s135_s24, 4 }
  0x14   : > { %s141_s27 = ssub.s32 (%p54_p4), 3, %s464_s25  ;;  %s809_s4 = scalar_lea.sflag (%p54_p4), [#allocation4], %s135_s24 }
  0x15   : > { %p142_p10 = scmp.lt.s32.totalorder (%p54_p4), %s141_s27, 2  ;;  %s139_s5 = scalar_lea.vmem (%p54_p4), [#allocation3], %s463_s26 }
  0x17   : > { %s919_s27 = smov (!%p142_p10, %s141_s27), 2 }
  0x18   : > { %s465_s28 = sshll.u32 %s919_s27, 3 }
  0x19   : > { %s145_s29 = ssub.s32 16, %s465_s28 }
  0x1a   : > { %s146_s30 = sshll.u32 %s145_s29, 4 }
  0x1b   : > { %147 = vsyncadd %s809_s4, %s146_s30  ;;  %p812_p11 = scmp.ne.s32.totalorder %s465_s28, 0  ;;  %s490_s7 = sshll.u32 %s699_s17, 4 }
  0x1c   : > { %s150_s10 = scalar_lea.hbm %s908_s1, %s490_s7  ;;  %s820_s11 = sshll.u32 %s139_s5, 4  ;;  %s155_s11 = int_to_ptr.vmem [resolvable:$true] %s820_s11 }
  0x1d   : > { %s152_s12 = sshll.u32 %s150_s10, 4  ;;  %s469_s13 = sshll.u32 %s919_s27, 7  ;;  %s823_s12 = int_to_ptr.hbm [resolvable:$true] %s152_s12 }
  0x1e   : > { %s594_s14 = sshra.s32 %s823_s12, 4  ;;  %s596_s19 = sshrl.u32 %s469_s13, 4  ;;  %s595_s14 = int_to_ptr.hbm [resolvable:$true] %s594_s14 }
  0x1f   : > { %s601_s20 = scalar_lea.hbm %s595_s14, %s596_s19  ;;  %s605_s26 = scalar_lea.hbm %s908_s1, 24 }
  0x20   : > { %p602_p12 = scmp.ne.s32.totalorder %s595_s14, %s601_s20  ;;  %p606_p1 = scmp.lt.s32.totalorder %s595_s14, %s908_s1 }
  0x21   : > { %p607_p2 = scmp.lt.s32.totalorder %s605_s26, %s601_s20 }
  0x22   : > { %p603_p13 = pnand %p602_p12, %p812_p11 }
  0x23   : > { %p608_p3 = por %p607_p2, %p606_p1 }
  0x24   : > { %p604_p0 = pneg %p603_p13 }
  0x26   : > { %p609_p4 = pnand %p608_p3, %p604_p0 }
  0x28   : > { %612 = shalt.err (!%p609_p4)
}
  0x29   : > { %s613_s30 = sshra.s32 %s155_s11, 4  ;;  %s733_s7 = smov [#allocation3]   ;;  %s614_s30 = int_to_ptr.vmem [resolvable:$true] %s613_s30 }
  0x2a   : > { %s620_s5 = scalar_lea.vmem %s614_s30, %s596_s19  ;;  %s624_s8 = scalar_lea.vmem %s733_s7, 32 }
  0x2b   : > { %p621_p5 = scmp.ne.s32.totalorder %s614_s30, %s620_s5  ;;  %p626_p10 = scmp.lt.s32.totalorder %s624_s8, %s620_s5 }
  0x2d   : > { %p622_p6 = pnand %p621_p5, %p812_p11 }
  0x2f   : > { %p623_p9 = pneg %p622_p6 }
  0x31   : > { %p628_p12 = pnand %p626_p10, %p623_p9 }
  0x33   : > { %631 = shalt.err (!%p628_p12)
}
  0x34   : > { %s734_s9 = smov 128   ;;  %s735_s10 = smov 8  }
  0x35   : > { %160 = dma.hbm_to_vmem [thread:$0]  (%p812_p11), %s823_s12, %s469_s13, %s155_s11, %s809_s4, %s734_s9, %s734_s9, %s735_s10  }
  0x36 PF: > { %p470_p13 = scmp.ge.s32.totalorder %s699_s17, 1  ;;  %p162_p0 = scmp.lt.s32.totalorder %s699_s17, 3 }
  0x38   : > { %p163_p1 = pnand %p470_p13, %p162_p0 }
  0x39   : > { %s168_s14 = sand.u32 (!%p163_p1), 1, %s691_s15  }
  0x3a   : > { %166 = sbr.rel (%p163_p1) target bundleno = 236 (0xec), region = 32  ;;  %s471_s19 = sshll.u32 (!%p163_p1), %s168_s14, 4 }
  0x3b   : > { %s169_s20 = scalar_lea.sflag (!%p163_p1), [#allocation4], %s168_s14  ;;  %s172_s24 = scalar_lea.vmem (!%p163_p1), [#allocation3], %s471_s19 }
  0x3f   : > { %682 = dma.done.wait (%p795_p7), %s169_s20, 256  }
  0x40   : > { %684 = vsyncadd (%p795_p7), %s169_s20, 4294967040  ;;  %v205_v0 = vld [vmem:[%s172_s24] sm:$0xff]  ;;  %v206_v3 = vld [vmem:[%s172_s24 + $0x8] sm:$0xff]  ;;  %vm215_vm0 = vcmask 261120   ;;  %s222_s17 = sld [smem:[#allocation2]]  ;;  %vm226_vm1 = vcmask 7168  }
  0x41   : > { %v593_v1 = vld [vmem:[%s909_s2] ss:$0 sm:$0xff]  ;;  %v208_v2 = vmul.f32 %v205_v0, %v205_v0  ;;  %v209_v5 = vmul.f32 %v206_v3, %v206_v3  ;;  %s859_s22 = scalar_lea.vmem [#allocation5], %s471_s19   ;;  %s474_s6 = sshll.u32 (%p799_p8), %s778_s0, 1 }
  0x42   : > { %s491_s11 = sshll.u32 (%p799_p8), %s778_s0, 4  ;;  %s237_s12 = ssub.s32 (%p799_p8), 3, %s474_s6 }
  0x43   : > { %v213_v4 = vmul.f32 %v593_v1, %v208_v2  ;;  %v214_v7 = vmul.f32 %v593_v1, %v209_v5  ;;  %s870_s26 = scalar_lea.vmem (%p799_p8), %s910_s3, %s491_s11   ;;  %p238_p7 = scmp.lt.s32.totalorder (%p799_p8), %s237_s12, 2 }
  0x45   : > { %v216_v6 = vsel %vm215_vm0, %v213_v4, 0.0  ;;  %v219_v8 = vsel %vm215_vm0, %v214_v7, 0.0 }
  0x46   : > { %217 = vadd.xlane.f32.xlu0 %v216_v6  ;;  %v223_v9 = vstv %s222_s17 }
  0x4e   : > { %220 = vadd.xlane.f32.xlu0 %v219_v8 }
  0xb9   : > { %v218_v10 = vpop.xlane.xlu0 %217 }
  0xba   : > { %v224_v11 = vadd.f32 %v223_v9, %v218_v10 }
  0xbc   : > { %227 = vst.msk [vmem:[%s859_s22] sm:$0xff] %vm226_vm1, %v224_v11 }
  0xc0   : > { %235 = sbr.rel (!%p799_p8) target bundleno = 236 (0xec), region = 40 }
  0xc1   : > { %v221_v12 = vpop.xlane.xlu0 %220 }
  0xc2   : > { %v225_v13 = vadd.f32 %v223_v9, %v221_v12 }
  0xc4   : > { %228 = vst.msk [vmem:[%s859_s22 + $0x8] sm:$0xff] %vm226_vm1, %v225_v13 }
  0xc5   : > { %s921_s12 = smov (!%p238_p7, %s237_s12), 2 }
  0xc6   : > { %s475_s28 = sshll.u32 %s921_s12, 3 }
  0xc7   : > { %p478_p11 = scmp.eq.s32.totalorder %s475_s28, 0 }
  0xc8   : > { %s876_s23 = sshrl.u32 (!%p478_p11), %s921_s12, 1 }
  0xc9   : > { %246 = sbr.rel (%p478_p11) target bundleno = 236 (0xec), region = 44  ;;  %p479_p8 = scmp.le.s32.totalorder (!%p478_p11), %s876_s23, 0 }
  0xce   : > { %413 = sbr.rel (%p479_p8) target bundleno = 219 (0xdb), region = 126  ;;  %s701_s0 = smov (!%p479_p8), %s870_s26  }
  0xcf   : > { %s705_s29 = smov (!%p479_p8), %s859_s22   ;;  %s709_s30 = smov (!%p479_p8), 0  }
  0xd0   : > { %s713_s5 = smov (!%p479_p8), 0  }
  0xd3 LB: >> { %v311_v14 = vld [vmem:[%s707_s29] sm:$0xff]  ;;  %v313_v15 = vld [vmem:[%s707_s29 + $0x8] sm:$0xff]  ;;  %s315_s7 = sadd.s32 1, %s711_s30  ;;  %s305_s5 = sadd.s32 1, %s715_s5   ;;  %s715_s5 = sphi %s713_s5, %s305_s5   ;;  %s711_s30 = sphi %s709_s30, %s710_s30   ;;  %s707_s29 = sphi %s705_s29, %s320_s29   ;;  %s703_s0 = sphi %s701_s0, %s321_s0  }
  0xd4   : >> { %312 = vst [vmem:[%s703_s0] sm:$0xff] %v311_v14  ;;  %p316_p2 = scmp.ge.s32.totalorder %s315_s7, %s876_s23  ;;  %p304_p3 = scmp.ge.s32.totalorder %s305_s5, %s876_s23 }
  0xd5   : >> { %314 = vst [vmem:[%s703_s0 + $0x8] sm:$0xff] %v313_v15 }
  0xd6   : >> { %s923_s7 = smov (%p316_p2, %s315_s7), 0  ;;  %307 = sbr.rel (!%p304_p3) target bundleno = 211 (0xd3), region = 132 }
  0xd7   : >> { %s480_s8 = sshll.u32 %s923_s7, 4  ;;  %s710_s30 = smov %s923_s7  }
  0xd8   : >> { %s320_s29 = scalar_lea.vmem %s859_s22, %s480_s8 [#allocation5]   ;;  %s321_s0 = scalar_lea.vmem %s870_s26, %s480_s8  }
  0xdb PF: > { %s886_s9 = sand.u32 1, %s921_s12   ;;  %s492_s10 = sshll.u32 %s876_s23, 4 }
  0xdc   : > { %s326_s14 = scalar_lea.vmem %s859_s22, %s492_s10 [#allocation5]   ;;  %s328_s19 = scalar_lea.vmem %s870_s26, %s492_s10  }
  0xdd   : > { %p485_p4 = scmp.le.s32.totalorder %s886_s9, 0 }
  0xde   : > { %s717_s20 = smov (!%p485_p4), %s328_s19   ;;  %s721_s24 = smov (!%p485_p4), %s326_s14  }
  0xdf   : > { %427 = sbr.rel (%p485_p4) target bundleno = 236 (0xec), region = 137  ;;  %s725_s27 = smov (!%p485_p4), 0  }
  0xe0   : > { %s729_s4 = smov (!%p485_p4), 0  }
  0xe4 LB: >> { %v338_v16 = vld [vmem:[%s723_s24] sm:$0xff]  ;;  %s340_s17 = sadd.s32 1, %s727_s27  ;;  %s332_s4 = sadd.s32 1, %s731_s4   ;;  %s731_s4 = sphi %s729_s4, %s332_s4   ;;  %s727_s27 = sphi %s725_s27, %s726_s27   ;;  %s723_s24 = sphi %s721_s24, %s345_s24   ;;  %s719_s20 = sphi %s717_s20, %s346_s20  }
  0xe5   : >> { %339 = vst [vmem:[%s719_s20] sm:$0xff] %v338_v16  ;;  %p341_p5 = scmp.ge.s32.totalorder %s340_s17, %s886_s9  ;;  %p331_p6 = scmp.ge.s32.totalorder %s332_s4, %s886_s9 }
  0xe7   : >> { %s925_s17 = smov (%p341_p5, %s340_s17), 0  ;;  %334 = sbr.rel (!%p331_p6) target bundleno = 228 (0xe4), region = 143 }
  0xe8   : >> { %s486_s22 = sshll.u32 %s925_s17, 3  ;;  %s726_s27 = smov %s925_s17  }
  0xe9   : >> { %s345_s24 = scalar_lea.vmem %s326_s14, %s486_s22 [#allocation5]   ;;  %s346_s20 = scalar_lea.vmem %s328_s19, %s486_s22  }
  0xec PF: > { %p14_p9 = scmp.ge.s32.totalorder %s781_s18, 4   ;;  %s914_s14 = smov %s691_s15 }
  0xed   : > { %s915_s15 = smov %s695_s16  ;;  %s916_s16 = smov %s791_s21 }
  0xee   : > { %s917_s17 = smov %s781_s18  ;;  %16 = sbr.rel (!%p14_p9) target bundleno = 5 (0x5), region = 154 }
  0xf3   :  { %362 = vsyncpa [#allocation4], 1 }
  0xf4   :  { %364 = vsyncpa [#allocation4 + $0x1], 1 }

</bundles_post_ra>
